<compile_context>
chip_gen: v7x
topology: tpu7x:2x2x1
jax: 0.10.0
libtpu: 0.0.40
codegen_flags: <defaults>
</compile_context>

<pallas_src>
import jax
import jax.numpy as jnp
import numpy as np
from jax import lax
from jax.experimental import pallas as pl
from jax.experimental.pallas import tpu as pltpu

# ---- static config (small shapes) ----
N, T = 2, 8
V = 5                 # num_points (hard-coded to 5 by the torch rearrange)
C = 4                 # in_channels == out_channels
H, DH = 2, 8          # heads, dim_head
I = H * DH            # attention inner dim
E = 2                 # num_experts
D = V * C             # token feature dim
NT = N * T            # flattened batch*time rows processed per kernel call
SCALE = DH ** -0.5
EPS = 1e-5            # LayerNorm eps (torch default)
SLOPE = 0.01          # LeakyReLU negative slope (torch default)
NEG_BIG = -1e30       # additive attention block-mask value

# packed parameter-row indices inside the (10, D) slab
_R_BOUT, _R_LN1G, _R_LN1B, _R_LN2G, _R_LN2B = 0, 1, 2, 3, 4
_R_GCNB0 = 5            # rows 5..5+E-1 : per-expert GCN bias (tiled over V)
_R_CONVB = 7            # conv bias broadcast to full D
_R_GATEB0 = 8           # rows 8..8+E-1 : per-expert gate bias broadcast to D


def _kernel(x_ref, wqkv_ref, wout_ref, gaterep_ref, gcnblk_ref,
            amask_ref, cmat_ref, prm_ref, out_ref):
    f32 = jnp.float32
    xf = x_ref[...]                       # (NT, D)  — all samples, flattened
    prm = prm_ref[...]                    # (10, D)  — packed bias / LN rows
    amask = amask_ref[...]                # (NT, NT) additive block mask

    # ------------------- attention block -------------------
    # single fused QKV projection; per-head lane slices of the 48-lane result
    qkv = jnp.dot(xf, wqkv_ref[...], preferred_element_type=f32)        # (NT, 3I)
    oh_parts = []
    for h in range(H):
        q = qkv[:, h * DH:(h + 1) * DH]                                 # (NT, DH)
        k = qkv[:, I + h * DH:I + (h + 1) * DH]
        v = qkv[:, 2 * I + h * DH:2 * I + (h + 1) * DH]
        # batched over samples; cross-sample entries killed by the block mask
        dots = lax.dot_general(q, k, (((1,), (1,)), ((), ())),
                               preferred_element_type=f32) * SCALE + amask
        m = jnp.max(dots, axis=-1, keepdims=True)
        p = jnp.exp(dots - m)
        attn = p / jnp.sum(p, axis=-1, keepdims=True)
        oh_parts.append(jnp.dot(attn, v, preferred_element_type=f32))   # (NT, DH)
    oh_all = jnp.concatenate(oh_parts, axis=-1)                         # (NT, I)
    # single fused output projection (== concat-over-heads @ wout)
    o = jnp.dot(oh_all, wout_ref[...], preferred_element_type=f32) \
        + prm[_R_BOUT:_R_BOUT + 1, :]

    # LayerNorm + LeakyReLU  (Dropout == identity in eval mode)
    mu = jnp.mean(o, axis=-1, keepdims=True)
    var = jnp.mean((o - mu) ** 2, axis=-1, keepdims=True)
    o = (o - mu) * lax.rsqrt(var + EPS) * prm[_R_LN1G:_R_LN1G + 1, :] \
        + prm[_R_LN1B:_R_LN1B + 1, :]
    o = jnp.where(o >= 0, o, SLOPE * o)
    y = o + xf                                                          # residual

    # ------------------- MoE gate (replicated over V) -------------------
    # gaterep columns are pre-replicated over V, so prob_e is already the
    # (NT, D)-wide gate logit per expert; routing decided per lane, identical
    # across the V copies by construction.  HIGHEST precision: routing must not
    # flip vs. an fp32 reference on near-tie logits.
    prob_rep = jnp.dot(y, gaterep_ref[...], preferred_element_type=f32,
                       precision=lax.Precision.HIGHEST)                 # (NT, E*D)
    prob_e = [prob_rep[:, e * D:(e + 1) * D]
              + prm[_R_GATEB0 + e:_R_GATEB0 + e + 1, :] for e in range(E)]
    pmax = prob_e[0]
    for e in range(1, E):
        pmax = jnp.maximum(pmax, prob_e[e])
    # first-index argmax semantics (same tie-break as torch/jnp.argmax)
    taken = jnp.zeros((NT, D), dtype=jnp.bool_)
    masks = []
    for e in range(E):
        hit = jnp.logical_and(prob_e[e] == pmax, jnp.logical_not(taken))
        taken = jnp.logical_or(taken, hit)
        masks.append(hit.astype(f32))

    # ------------------- expert GCNs (fused, block-diagonal kron) -------------------
    z = jnp.concatenate([masks[e] * y for e in range(E)], axis=-1)      # (NT, E*D)
    g = jnp.dot(z, gcnblk_ref[...], preferred_element_type=f32)         # (NT, E*D)
    acc = y                                                             # residual (C_in == C_out)
    for e in range(E):
        ge = g[:, e * D:(e + 1) * D] + prm[_R_GCNB0 + e:_R_GCNB0 + e + 1, :]
        acc = acc + masks[e] * ge

    # ------------------- causal conv over T (1x3, left-pad 2) -------------------
    # precomputed block-diagonal (NT, NT) conv matrix; bias as a full-D row
    yc = jnp.dot(cmat_ref[...], acc, preferred_element_type=f32) \
        + prm[_R_CONVB:_R_CONVB + 1, :]

    # ------------------- final LayerNorm + LeakyReLU -------------------
    mu2 = jnp.mean(yc, axis=-1, keepdims=True)
    var2 = jnp.mean((yc - mu2) ** 2, axis=-1, keepdims=True)
    o2 = (yc - mu2) * lax.rsqrt(var2 + EPS) * prm[_R_LN2G:_R_LN2G + 1, :] \
        + prm[_R_LN2B:_R_LN2B + 1, :]
    out_ref[...] = jnp.where(o2 >= 0, o2, SLOPE * o2)


def moe_gcn_transformer_unit(x, A, params):
    n_, t_, d_ = x.shape
    assert (n_, t_, d_) == (N, T, D)
    f32 = x.dtype

    # --- wrapper glue: adjacency normalisation & parameter repacking (plain JAX) ---
    deg = A.sum(axis=1)
    dinv = deg ** -0.5            # NOTE: inf/NaN if a node has zero degree (matches torch)
    nA = (dinv[:, None] * A) * dinv[None, :]                            # (V, V)

    eyeC = jnp.eye(C, dtype=f32)

    # gate matrix pre-replicated over V: prob_rep[r, e*D + v*C + c] = gate logit (r, c, e)
    gate_rep = jnp.concatenate(
        [jnp.tile(jnp.kron(params['gate_w'][:, e:e + 1], eyeC), (1, V))
         for e in range(E)], axis=1)                                    # (D, E*D)

    # block-diagonal expert-GCN kron: block e = kron(normA^T, W_e) on d = v*C + c
    gcnblk = jnp.zeros((E * D, E * D), f32)
    for e in range(E):
        blk = jnp.kron(nA.T, params['gcn_w'][e])                        # (D, D)
        gcnblk = gcnblk.at[e * D:(e + 1) * D, e * D:(e + 1) * D].set(blk)

    # attention additive block mask: 0 within a sample's TxT block, -1e30 across samples
    rr = jnp.arange(NT)
    same = (rr[:, None] // T) == (rr[None, :] // T)
    amask = jnp.where(same, 0.0, NEG_BIG).astype(f32)                   # (NT, NT)

    # causal conv (kernel 1x3, left zero-pad 2) as a banded (T,T) matrix,
    # block-diagonal over the N samples of the flattened slab.
    r = jnp.arange(T)
    dmat = r[:, None] - r[None, :]
    w = params['conv_w']
    cm = (w[2] * (dmat == 0) + w[1] * (dmat == 1) + w[0] * (dmat == 2)).astype(f32)
    cmat = jnp.kron(jnp.eye(N, dtype=f32), cm)                          # (NT, NT)

    prm = jnp.stack([
        params['bout'], params['ln1_g'], params['ln1_b'],
        params['ln2_g'], params['ln2_b'],
        jnp.tile(params['gcn_b'][0], V), jnp.tile(params['gcn_b'][1], V),
        jnp.full((D,), params['conv_b'][0], dtype=f32),
        jnp.full((D,), params['gate_b'][0], dtype=f32),
        jnp.full((D,), params['gate_b'][1], dtype=f32),
    ])                                                                  # (10, D)

    xf = x.reshape(NT, D)

    def full_spec(shape):
        nd = len(shape)
        return pl.BlockSpec(shape, lambda i, _nd=nd: (0,) * _nd)

    in_specs = [
        full_spec((NT, D)),              # x (flattened)
        full_spec((D, 3 * I)),           # fused qkv weights
        full_spec((I, D)),               # output projection
        full_spec((D, E * D)),           # gate, replicated over V
        full_spec((E * D, E * D)),       # block-diagonal GCN kron
        full_spec((NT, NT)),             # attention block mask
        full_spec((NT, NT)),             # block-diag causal-conv matrix
        full_spec((10, D)),              # packed bias / LN rows
    ]
    out_spec = full_spec((NT, D))

    out = pl.pallas_call(
        _kernel,
        out_shape=jax.ShapeDtypeStruct((NT, D), f32),
        grid=(1,),                       # whole batch in one step (see header note)
        in_specs=in_specs,
        out_specs=out_spec,
        compiler_params=pltpu.CompilerParams(dimension_semantics=("arbitrary",)),
    )(xf, params['wqkv'], params['wout'], gate_rep, gcnblk, amask, cmat, prm)
    return out.reshape(N, T, D)


# ------------------- pure-JAX reference (mirrors the torch code) -------------------
def reference(x, A, params):
    n_, t_, _ = x.shape

    def layernorm(v, g, b):
        mu = v.mean(-1, keepdims=True)
        var = ((v - mu) ** 2).mean(-1, keepdims=True)
        return (v - mu) / jnp.sqrt(var + EPS) * g + b

    leaky = lambda v: jnp.where(v >= 0, v, SLOPE * v)

    qkv = x @ params['wqkv']
    q, k, v = jnp.split(qkv, 3, axis=-1)
    sh = lambda z: z.reshape(n_, t_, H, DH).transpose(0, 2, 1, 3)
    q, k, v = sh(q), sh(k), sh(v)
    dots = jnp.einsum('bhid,bhjd->bhij', q, k) * SCALE
    attn = jax.nn.softmax(dots, axis=-1)
    o = jnp.einsum('bhij,bhjd->bhid', attn, v)
    o = o.transpose(0, 2, 1, 3).reshape(n_, t_, I)
    o = o @ params['wout'] + params['bout']
    o = leaky(layernorm(o, params['ln1_g'], params['ln1_b']))
    y = o + x

    y_vc = y.reshape(n_, t_, V, C)
    y_cv = jnp.transpose(y_vc, (0, 1, 3, 2))
    prob = jnp.einsum('ntcv,ve->ntce', y_cv, params['gate_w'],
                      precision='highest') + params['gate_b']
    idx = jnp.argmax(prob, axis=3)

    deg = A.sum(1)
    Dm = jnp.diag(deg ** -0.5)
    nA = Dm @ A @ Dm

    acc = y_vc
    for e in range(E):
        mask = (idx == e).astype(x.dtype)                           # (N,T,C)
        z_cv = y_cv * mask[..., None]
        X = jnp.transpose(z_cv, (0, 1, 3, 2))                       # (N,T,V,C)
        support = jnp.einsum('ntik,kj->ntij', X, params['gcn_w'][e])
        gout = jnp.einsum('ki,ntij->ntkj', nA, support) + params['gcn_b'][e]
        gout_cv = jnp.transpose(gout, (0, 1, 3, 2)) * mask[..., None]
        acc = acc + jnp.transpose(gout_cv, (0, 1, 3, 2))

    yr = jnp.transpose(acc, (0, 2, 3, 1)).reshape(n_ * V, C, t_)    # (N V) C T
    pad = jnp.pad(yr, ((0, 0), (0, 0), (2, 0)))
    w = params['conv_w']
    b = params['conv_b'][0]
    conv = (w[0] * pad[:, :, 0:t_] + w[1] * pad[:, :, 1:t_ + 1]
            + w[2] * pad[:, :, 2:t_ + 2] + b)
    yf = conv.reshape(n_, V, C, t_).transpose(0, 3, 1, 2).reshape(n_, t_, V * C)
    return leaky(layernorm(yf, params['ln2_g'], params['ln2_b']))


if __name__ == "__main__":
    key = jax.random.PRNGKey(0)
    ks = jax.random.split(key, 16)
    f32 = jnp.float32
    params = {
        'wqkv':   0.2 * jax.random.normal(ks[0], (D, 3 * I), f32),
        'wout':   0.2 * jax.random.normal(ks[1], (I, D), f32),
        'bout':   0.1 * jax.random.normal(ks[2], (D,), f32),
        'ln1_g':  1.0 + 0.1 * jax.random.normal(ks[3], (D,), f32),
        'ln1_b':  0.1 * jax.random.normal(ks[4], (D,), f32),
        'gate_w': jax.random.normal(ks[5], (V, E), f32),
        'gate_b': 0.1 * jax.random.normal(ks[6], (E,), f32),
        'gcn_w':  0.5 * jax.random.normal(ks[7], (E, C, C), f32),
        'gcn_b':  0.1 * jax.random.normal(ks[8], (E, C), f32),
        'conv_w': 0.5 * jax.random.normal(ks[9], (3,), f32),
        'conv_b': 0.1 * jax.random.normal(ks[10], (1,), f32),
        'ln2_g':  1.0 + 0.1 * jax.random.normal(ks[11], (D,), f32),
        'ln2_b':  0.1 * jax.random.normal(ks[12], (D,), f32),
    }
    x = jax.random.normal(ks[13], (N, T, D), f32)
    A = jnp.abs(jax.random.normal(ks[14], (V, V), f32)) + jnp.eye(V, dtype=f32)

    out = moe_gcn_transformer_unit(x, A, params)
    out = jax.block_until_ready(out)

    ref = reference(x, A, params)
    # tolerance accounts for default (single-pass bf16-input) MXU precision on
    # most matmuls (only the routing-critical gate matmul runs at HIGHEST).
    np.testing.assert_allclose(np.asarray(out), np.asarray(ref), rtol=5e-2, atol=5e-2)
    # TODO(synk): nn.Dropout layers are identity here (eval-mode semantics).
    print("KERNEL_OK")
</pallas_src>

<mosaic_0001>
module attributes {stable_mosaic.version = 11 : i64} {
  func.func @_kernel(%arg0: i32, %arg1: memref<16x20xf32, #tpu.memory_space<vmem>>, %arg2: memref<20x48xf32, #tpu.memory_space<vmem>>, %arg3: memref<16x20xf32, #tpu.memory_space<vmem>>, %arg4: memref<20x40xf32, #tpu.memory_space<vmem>>, %arg5: memref<40x40xf32, #tpu.memory_space<vmem>>, %arg6: memref<16x16xf32, #tpu.memory_space<vmem>>, %arg7: memref<16x16xf32, #tpu.memory_space<vmem>>, %arg8: memref<10x20xf32, #tpu.memory_space<vmem>>, %arg9: memref<16x20xf32, #tpu.memory_space<vmem>>) attributes {dimension_semantics = [#tpu.dimension_semantics<arbitrary>], iteration_bounds = array<i64: 1>, scalar_prefetch = 0 : i64, scratch_operands = 0 : i64, tpu.core_type = #tpu.core_type<tc>, window_params = [{pipeline_mode = #tpu.pipeline_mode<synchronous>, transform_indices = @transform_0, window_bounds = array<i64: 16, 20>}, {pipeline_mode = #tpu.pipeline_mode<synchronous>, transform_indices = @transform_1, window_bounds = array<i64: 20, 48>}, {pipeline_mode = #tpu.pipeline_mode<synchronous>, transform_indices = @transform_2, window_bounds = array<i64: 16, 20>}, {pipeline_mode = #tpu.pipeline_mode<synchronous>, transform_indices = @transform_3, window_bounds = array<i64: 20, 40>}, {pipeline_mode = #tpu.pipeline_mode<synchronous>, transform_indices = @transform_4, window_bounds = array<i64: 40, 40>}, {pipeline_mode = #tpu.pipeline_mode<synchronous>, transform_indices = @transform_5, window_bounds = array<i64: 16, 16>}, {pipeline_mode = #tpu.pipeline_mode<synchronous>, transform_indices = @transform_6, window_bounds = array<i64: 16, 16>}, {pipeline_mode = #tpu.pipeline_mode<synchronous>, transform_indices = @transform_7, window_bounds = array<i64: 10, 20>}, {pipeline_mode = #tpu.pipeline_mode<synchronous>, transform_indices = @transform_8, window_bounds = array<i64: 16, 20>}]} {
    %c0 = arith.constant 0 : index
    %c0_0 = arith.constant 0 : index
    %0 = vector.load %arg1[%c0, %c0_0] : memref<16x20xf32, #tpu.memory_space<vmem>>, vector<16x20xf32>
    %c0_1 = arith.constant 0 : index
    %c0_2 = arith.constant 0 : index
    %1 = vector.load %arg8[%c0_1, %c0_2] : memref<10x20xf32, #tpu.memory_space<vmem>>, vector<10x20xf32>
    %c0_3 = arith.constant 0 : index
    %c0_4 = arith.constant 0 : index
    %2 = vector.load %arg6[%c0_3, %c0_4] : memref<16x16xf32, #tpu.memory_space<vmem>>, vector<16x16xf32>
    %c0_5 = arith.constant 0 : index
    %c0_6 = arith.constant 0 : index
    %3 = vector.load %arg2[%c0_5, %c0_6] : memref<20x48xf32, #tpu.memory_space<vmem>>, vector<20x48xf32>
    %cst = arith.constant dense<0.000000e+00> : vector<16x48xf32>
    %4 = tpu.matmul %0, %3, %cst {dimension_numbers = #tpu.dot_dimension_numbers<[1], [0], [0], [1], [0, 0, 1, 1], [], []>} : vector<16x20xf32>, vector<20x48xf32>, vector<16x48xf32> -> vector<16x48xf32>
    %5 = vector.extract_strided_slice %4 {offsets = [0, 0], sizes = [16, 8], strides = [1, 1]} : vector<16x48xf32> to vector<16x8xf32>
    %6 = vector.extract_strided_slice %4 {offsets = [0, 16], sizes = [16, 8], strides = [1, 1]} : vector<16x48xf32> to vector<16x8xf32>
    %7 = vector.extract_strided_slice %4 {offsets = [0, 32], sizes = [16, 8], strides = [1, 1]} : vector<16x48xf32> to vector<16x8xf32>
    %cst_7 = arith.constant dense<0.000000e+00> : vector<16x16xf32>
    %8 = tpu.matmul %5, %6, %cst_7 {dimension_numbers = #tpu.dot_dimension_numbers<[1], [1], [0], [0], [0, 0, 1, 0], [], []>} : vector<16x8xf32>, vector<16x8xf32>, vector<16x16xf32> -> vector<16x16xf32>
    %cst_8 = arith.constant 0.353553385 : f32
    %9 = vector.broadcast %cst_8 : f32 to vector<16x16xf32>
    %10 = arith.mulf %8, %9 : vector<16x16xf32>
    %11 = arith.addf %10, %2 : vector<16x16xf32>
    %cst_9 = arith.constant dense<0xFF800000> : vector<16xf32>
    %12 = vector.multi_reduction <maximumf>, %11, %cst_9 [1] : vector<16x16xf32> to vector<16xf32>
    %13 = vector.shape_cast %12 : vector<16xf32> to vector<16x1xf32>
    %14 = vector.broadcast %13 : vector<16x1xf32> to vector<16x16xf32>
    %15 = arith.subf %11, %14 : vector<16x16xf32>
    %16 = math.exp %15 : vector<16x16xf32>
    %cst_10 = arith.constant dense<0.000000e+00> : vector<16xf32>
    %17 = vector.multi_reduction <add>, %16, %cst_10 [1] : vector<16x16xf32> to vector<16xf32>
    %18 = vector.shape_cast %17 : vector<16xf32> to vector<16x1xf32>
    %19 = vector.broadcast %18 : vector<16x1xf32> to vector<16x16xf32>
    %20 = arith.divf %16, %19 : vector<16x16xf32>
    %cst_11 = arith.constant dense<0.000000e+00> : vector<16x8xf32>
    %21 = tpu.matmul %20, %7, %cst_11 {dimension_numbers = #tpu.dot_dimension_numbers<[1], [0], [0], [1], [0, 0, 1, 1], [], []>} : vector<16x16xf32>, vector<16x8xf32>, vector<16x8xf32> -> vector<16x8xf32>
    %22 = vector.extract_strided_slice %4 {offsets = [0, 8], sizes = [16, 8], strides = [1, 1]} : vector<16x48xf32> to vector<16x8xf32>
    %23 = vector.extract_strided_slice %4 {offsets = [0, 24], sizes = [16, 8], strides = [1, 1]} : vector<16x48xf32> to vector<16x8xf32>
    %24 = vector.extract_strided_slice %4 {offsets = [0, 40], sizes = [16, 8], strides = [1, 1]} : vector<16x48xf32> to vector<16x8xf32>
    %cst_12 = arith.constant dense<0.000000e+00> : vector<16x16xf32>
    %25 = tpu.matmul %22, %23, %cst_12 {dimension_numbers = #tpu.dot_dimension_numbers<[1], [1], [0], [0], [0, 0, 1, 0], [], []>} : vector<16x8xf32>, vector<16x8xf32>, vector<16x16xf32> -> vector<16x16xf32>
    %cst_13 = arith.constant 0.353553385 : f32
    %26 = vector.broadcast %cst_13 : f32 to vector<16x16xf32>
    %27 = arith.mulf %25, %26 : vector<16x16xf32>
    %28 = arith.addf %27, %2 : vector<16x16xf32>
    %cst_14 = arith.constant dense<0xFF800000> : vector<16xf32>
    %29 = vector.multi_reduction <maximumf>, %28, %cst_14 [1] : vector<16x16xf32> to vector<16xf32>
    %30 = vector.shape_cast %29 : vector<16xf32> to vector<16x1xf32>
    %31 = vector.broadcast %30 : vector<16x1xf32> to vector<16x16xf32>
    %32 = arith.subf %28, %31 : vector<16x16xf32>
    %33 = math.exp %32 : vector<16x16xf32>
    %cst_15 = arith.constant dense<0.000000e+00> : vector<16xf32>
    %34 = vector.multi_reduction <add>, %33, %cst_15 [1] : vector<16x16xf32> to vector<16xf32>
    %35 = vector.shape_cast %34 : vector<16xf32> to vector<16x1xf32>
    %36 = vector.broadcast %35 : vector<16x1xf32> to vector<16x16xf32>
    %37 = arith.divf %33, %36 : vector<16x16xf32>
    %cst_16 = arith.constant dense<0.000000e+00> : vector<16x8xf32>
    %38 = tpu.matmul %37, %24, %cst_16 {dimension_numbers = #tpu.dot_dimension_numbers<[1], [0], [0], [1], [0, 0, 1, 1], [], []>} : vector<16x16xf32>, vector<16x8xf32>, vector<16x8xf32> -> vector<16x8xf32>
    %39 = tpu.concatenate %21, %38 in 1 : vector<16x8xf32>, vector<16x8xf32> -> vector<16x16xf32>
    %c0_17 = arith.constant 0 : index
    %c0_18 = arith.constant 0 : index
    %40 = vector.load %arg3[%c0_17, %c0_18] : memref<16x20xf32, #tpu.memory_space<vmem>>, vector<16x20xf32>
    %cst_19 = arith.constant dense<0.000000e+00> : vector<16x20xf32>
    %41 = tpu.matmul %39, %40, %cst_19 {dimension_numbers = #tpu.dot_dimension_numbers<[1], [0], [0], [1], [0, 0, 1, 1], [], []>} : vector<16x16xf32>, vector<16x20xf32>, vector<16x20xf32> -> vector<16x20xf32>
    %42 = vector.extract_strided_slice %1 {offsets = [0, 0], sizes = [1, 20], strides = [1, 1]} : vector<10x20xf32> to vector<1x20xf32>
    %43 = vector.broadcast %42 : vector<1x20xf32> to vector<16x20xf32>
    %44 = arith.addf %41, %43 : vector<16x20xf32>
    %cst_20 = arith.constant dense<0.000000e+00> : vector<16xf32>
    %45 = vector.multi_reduction <add>, %44, %cst_20 [1] : vector<16x20xf32> to vector<16xf32>
    %46 = vector.shape_cast %45 : vector<16xf32> to vector<16x1xf32>
    %cst_21 = arith.constant 2.000000e+01 : f32
    %47 = vector.broadcast %cst_21 : f32 to vector<16x1xf32>
    %48 = arith.divf %46, %47 : vector<16x1xf32>
    %49 = vector.broadcast %48 : vector<16x1xf32> to vector<16x20xf32>
    %50 = arith.subf %44, %49 : vector<16x20xf32>
    %51 = arith.mulf %50, %50 : vector<16x20xf32>
    %cst_22 = arith.constant dense<0.000000e+00> : vector<16xf32>
    %52 = vector.multi_reduction <add>, %51, %cst_22 [1] : vector<16x20xf32> to vector<16xf32>
    %53 = vector.shape_cast %52 : vector<16xf32> to vector<16x1xf32>
    %cst_23 = arith.constant 2.000000e+01 : f32
    %54 = vector.broadcast %cst_23 : f32 to vector<16x1xf32>
    %55 = arith.divf %53, %54 : vector<16x1xf32>
    %56 = vector.broadcast %48 : vector<16x1xf32> to vector<16x20xf32>
    %57 = arith.subf %44, %56 : vector<16x20xf32>
    %cst_24 = arith.constant 9.99999974E-6 : f32
    %58 = vector.broadcast %cst_24 : f32 to vector<16x1xf32>
    %59 = arith.addf %55, %58 : vector<16x1xf32>
    %60 = math.rsqrt %59 : vector<16x1xf32>
    %61 = vector.broadcast %60 : vector<16x1xf32> to vector<16x20xf32>
    %62 = arith.mulf %57, %61 : vector<16x20xf32>
    %63 = vector.extract_strided_slice %1 {offsets = [1, 0], sizes = [1, 20], strides = [1, 1]} : vector<10x20xf32> to vector<1x20xf32>
    %64 = vector.broadcast %63 : vector<1x20xf32> to vector<16x20xf32>
    %65 = arith.mulf %62, %64 : vector<16x20xf32>
    %66 = vector.extract_strided_slice %1 {offsets = [2, 0], sizes = [1, 20], strides = [1, 1]} : vector<10x20xf32> to vector<1x20xf32>
    %67 = vector.broadcast %66 : vector<1x20xf32> to vector<16x20xf32>
    %68 = arith.addf %65, %67 : vector<16x20xf32>
    %cst_25 = arith.constant 0.000000e+00 : f32
    %69 = vector.broadcast %cst_25 : f32 to vector<16x20xf32>
    %70 = arith.cmpf oge, %68, %69 : vector<16x20xf32>
    %cst_26 = arith.constant 0.00999999977 : f32
    %71 = vector.broadcast %cst_26 : f32 to vector<16x20xf32>
    %72 = arith.mulf %71, %68 : vector<16x20xf32>
    %73 = arith.select %70, %68, %72 : vector<16x20xi1>, vector<16x20xf32>
    %74 = arith.addf %73, %0 : vector<16x20xf32>
    %c0_27 = arith.constant 0 : index
    %c0_28 = arith.constant 0 : index
    %75 = vector.load %arg4[%c0_27, %c0_28] : memref<20x40xf32, #tpu.memory_space<vmem>>, vector<20x40xf32>
    %cst_29 = arith.constant dense<0.000000e+00> : vector<16x40xf32>
    %76 = tpu.matmul %74, %75, %cst_29 {dimension_numbers = #tpu.dot_dimension_numbers<[1], [0], [0], [1], [0, 0, 1, 1], [], []>, precision = #tpu.contract_precision<fp32>} : vector<16x20xf32>, vector<20x40xf32>, vector<16x40xf32> -> vector<16x40xf32>
    %77 = vector.extract_strided_slice %76 {offsets = [0, 0], sizes = [16, 20], strides = [1, 1]} : vector<16x40xf32> to vector<16x20xf32>
    %78 = vector.extract_strided_slice %1 {offsets = [8, 0], sizes = [1, 20], strides = [1, 1]} : vector<10x20xf32> to vector<1x20xf32>
    %79 = vector.broadcast %78 : vector<1x20xf32> to vector<16x20xf32>
    %80 = arith.addf %77, %79 : vector<16x20xf32>
    %81 = vector.extract_strided_slice %76 {offsets = [0, 20], sizes = [16, 20], strides = [1, 1]} : vector<16x40xf32> to vector<16x20xf32>
    %82 = vector.extract_strided_slice %1 {offsets = [9, 0], sizes = [1, 20], strides = [1, 1]} : vector<10x20xf32> to vector<1x20xf32>
    %83 = vector.broadcast %82 : vector<1x20xf32> to vector<16x20xf32>
    %84 = arith.addf %81, %83 : vector<16x20xf32>
    %85 = arith.maximumf %80, %84 : vector<16x20xf32>
    %false = arith.constant false
    %86 = vector.broadcast %false : i1 to vector<16x20xi1>
    %87 = arith.cmpf oeq, %80, %85 : vector<16x20xf32>
    %cst_30 = arith.constant dense<true> : vector<16x20xi1>
    %88 = arith.xori %86, %cst_30 : vector<16x20xi1>
    %89 = arith.andi %87, %88 : vector<16x20xi1>
    %90 = arith.ori %86, %89 : vector<16x20xi1>
    %91 = arith.extui %89 : vector<16x20xi1> to vector<16x20xi32>
    %92 = arith.sitofp %91 : vector<16x20xi32> to vector<16x20xf32>
    %93 = arith.cmpf oeq, %84, %85 : vector<16x20xf32>
    %cst_31 = arith.constant dense<true> : vector<16x20xi1>
    %94 = arith.xori %90, %cst_31 : vector<16x20xi1>
    %95 = arith.andi %93, %94 : vector<16x20xi1>
    %96 = arith.extui %95 : vector<16x20xi1> to vector<16x20xi32>
    %97 = arith.sitofp %96 : vector<16x20xi32> to vector<16x20xf32>
    %98 = arith.mulf %92, %74 : vector<16x20xf32>
    %99 = arith.mulf %97, %74 : vector<16x20xf32>
    %100 = tpu.concatenate %98, %99 in 1 : vector<16x20xf32>, vector<16x20xf32> -> vector<16x40xf32>
    %c0_32 = arith.constant 0 : index
    %c0_33 = arith.constant 0 : index
    %101 = vector.load %arg5[%c0_32, %c0_33] : memref<40x40xf32, #tpu.memory_space<vmem>>, vector<40x40xf32>
    %cst_34 = arith.constant dense<0.000000e+00> : vector<16x40xf32>
    %102 = tpu.matmul %100, %101, %cst_34 {dimension_numbers = #tpu.dot_dimension_numbers<[1], [0], [0], [1], [0, 0, 1, 1], [], []>} : vector<16x40xf32>, vector<40x40xf32>, vector<16x40xf32> -> vector<16x40xf32>
    %103 = vector.extract_strided_slice %102 {offsets = [0, 0], sizes = [16, 20], strides = [1, 1]} : vector<16x40xf32> to vector<16x20xf32>
    %104 = vector.extract_strided_slice %1 {offsets = [5, 0], sizes = [1, 20], strides = [1, 1]} : vector<10x20xf32> to vector<1x20xf32>
    %105 = vector.broadcast %104 : vector<1x20xf32> to vector<16x20xf32>
    %106 = arith.addf %103, %105 : vector<16x20xf32>
    %107 = arith.mulf %92, %106 : vector<16x20xf32>
    %108 = arith.addf %74, %107 : vector<16x20xf32>
    %109 = vector.extract_strided_slice %102 {offsets = [0, 20], sizes = [16, 20], strides = [1, 1]} : vector<16x40xf32> to vector<16x20xf32>
    %110 = vector.extract_strided_slice %1 {offsets = [6, 0], sizes = [1, 20], strides = [1, 1]} : vector<10x20xf32> to vector<1x20xf32>
    %111 = vector.broadcast %110 : vector<1x20xf32> to vector<16x20xf32>
    %112 = arith.addf %109, %111 : vector<16x20xf32>
    %113 = arith.mulf %97, %112 : vector<16x20xf32>
    %114 = arith.addf %108, %113 : vector<16x20xf32>
    %c0_35 = arith.constant 0 : index
    %c0_36 = arith.constant 0 : index
    %115 = vector.load %arg7[%c0_35, %c0_36] : memref<16x16xf32, #tpu.memory_space<vmem>>, vector<16x16xf32>
    %cst_37 = arith.constant dense<0.000000e+00> : vector<16x20xf32>
    %116 = tpu.matmul %115, %114, %cst_37 {dimension_numbers = #tpu.dot_dimension_numbers<[1], [0], [0], [1], [0, 0, 1, 1], [], []>} : vector<16x16xf32>, vector<16x20xf32>, vector<16x20xf32> -> vector<16x20xf32>
    %117 = vector.extract_strided_slice %1 {offsets = [7, 0], sizes = [1, 20], strides = [1, 1]} : vector<10x20xf32> to vector<1x20xf32>
    %118 = vector.broadcast %117 : vector<1x20xf32> to vector<16x20xf32>
    %119 = arith.addf %116, %118 : vector<16x20xf32>
    %cst_38 = arith.constant dense<0.000000e+00> : vector<16xf32>
    %120 = vector.multi_reduction <add>, %119, %cst_38 [1] : vector<16x20xf32> to vector<16xf32>
    %121 = vector.shape_cast %120 : vector<16xf32> to vector<16x1xf32>
    %cst_39 = arith.constant 2.000000e+01 : f32
    %122 = vector.broadcast %cst_39 : f32 to vector<16x1xf32>
    %123 = arith.divf %121, %122 : vector<16x1xf32>
    %124 = vector.broadcast %123 : vector<16x1xf32> to vector<16x20xf32>
    %125 = arith.subf %119, %124 : vector<16x20xf32>
    %126 = arith.mulf %125, %125 : vector<16x20xf32>
    %cst_40 = arith.constant dense<0.000000e+00> : vector<16xf32>
    %127 = vector.multi_reduction <add>, %126, %cst_40 [1] : vector<16x20xf32> to vector<16xf32>
    %128 = vector.shape_cast %127 : vector<16xf32> to vector<16x1xf32>
    %cst_41 = arith.constant 2.000000e+01 : f32
    %129 = vector.broadcast %cst_41 : f32 to vector<16x1xf32>
    %130 = arith.divf %128, %129 : vector<16x1xf32>
    %131 = vector.broadcast %123 : vector<16x1xf32> to vector<16x20xf32>
    %132 = arith.subf %119, %131 : vector<16x20xf32>
    %cst_42 = arith.constant 9.99999974E-6 : f32
    %133 = vector.broadcast %cst_42 : f32 to vector<16x1xf32>
    %134 = arith.addf %130, %133 : vector<16x1xf32>
    %135 = math.rsqrt %134 : vector<16x1xf32>
    %136 = vector.broadcast %135 : vector<16x1xf32> to vector<16x20xf32>
    %137 = arith.mulf %132, %136 : vector<16x20xf32>
    %138 = vector.extract_strided_slice %1 {offsets = [3, 0], sizes = [1, 20], strides = [1, 1]} : vector<10x20xf32> to vector<1x20xf32>
    %139 = vector.broadcast %138 : vector<1x20xf32> to vector<16x20xf32>
    %140 = arith.mulf %137, %139 : vector<16x20xf32>
    %141 = vector.extract_strided_slice %1 {offsets = [4, 0], sizes = [1, 20], strides = [1, 1]} : vector<10x20xf32> to vector<1x20xf32>
    %142 = vector.broadcast %141 : vector<1x20xf32> to vector<16x20xf32>
    %143 = arith.addf %140, %142 : vector<16x20xf32>
    %cst_43 = arith.constant 0.000000e+00 : f32
    %144 = vector.broadcast %cst_43 : f32 to vector<16x20xf32>
    %145 = arith.cmpf oge, %143, %144 : vector<16x20xf32>
    %cst_44 = arith.constant 0.00999999977 : f32
    %146 = vector.broadcast %cst_44 : f32 to vector<16x20xf32>
    %147 = arith.mulf %146, %143 : vector<16x20xf32>
    %148 = arith.select %145, %143, %147 : vector<16x20xi1>, vector<16x20xf32>
    %c0_45 = arith.constant 0 : index
    %c0_46 = arith.constant 0 : index
    %149 = vector.load %arg9[%c0_45, %c0_46] : memref<16x20xf32, #tpu.memory_space<vmem>>, vector<16x20xf32>
    tpu.vector_store %arg9[%c0_45, %c0_46], %148 {strides = array<i32>} : memref<16x20xf32, #tpu.memory_space<vmem>>, vector<16x20xf32>,
    return
  }
  func.func @transform_0(%arg0: i32) -> (i32, i32) {
    %c0_i32 = arith.constant 0 : i32
    %c0_i32_0 = arith.constant 0 : i32
    %c0_i32_1 = arith.constant 0 : i32
    return %c0_i32, %c0_i32_0 : i32, i32
  }
  func.func @transform_1(%arg0: i32) -> (i32, i32) {
    %c0_i32 = arith.constant 0 : i32
    %c0_i32_0 = arith.constant 0 : i32
    %c0_i32_1 = arith.constant 0 : i32
    return %c0_i32, %c0_i32_0 : i32, i32
  }
  func.func @transform_2(%arg0: i32) -> (i32, i32) {
    %c0_i32 = arith.constant 0 : i32
    %c0_i32_0 = arith.constant 0 : i32
    %c0_i32_1 = arith.constant 0 : i32
    return %c0_i32, %c0_i32_0 : i32, i32
  }
  func.func @transform_3(%arg0: i32) -> (i32, i32) {
    %c0_i32 = arith.constant 0 : i32
    %c0_i32_0 = arith.constant 0 : i32
    %c0_i32_1 = arith.constant 0 : i32
    return %c0_i32, %c0_i32_0 : i32, i32
  }
  func.func @transform_4(%arg0: i32) -> (i32, i32) {
    %c0_i32 = arith.constant 0 : i32
    %c0_i32_0 = arith.constant 0 : i32
    %c0_i32_1 = arith.constant 0 : i32
    return %c0_i32, %c0_i32_0 : i32, i32
  }
  func.func @transform_5(%arg0: i32) -> (i32, i32) {
    %c0_i32 = arith.constant 0 : i32
    %c0_i32_0 = arith.constant 0 : i32
    %c0_i32_1 = arith.constant 0 : i32
    return %c0_i32, %c0_i32_0 : i32, i32
  }
  func.func @transform_6(%arg0: i32) -> (i32, i32) {
    %c0_i32 = arith.constant 0 : i32
    %c0_i32_0 = arith.constant 0 : i32
    %c0_i32_1 = arith.constant 0 : i32
    return %c0_i32, %c0_i32_0 : i32, i32
  }
  func.func @transform_7(%arg0: i32) -> (i32, i32) {
    %c0_i32 = arith.constant 0 : i32
    %c0_i32_0 = arith.constant 0 : i32
    %c0_i32_1 = arith.constant 0 : i32
    return %c0_i32, %c0_i32_0 : i32, i32
  }
  func.func @transform_8(%arg0: i32) -> (i32, i32) {
    %c0_i32 = arith.constant 0 : i32
    %c0_i32_0 = arith.constant 0 : i32
    %c0_i32_1 = arith.constant 0 : i32
    return %c0_i32, %c0_i32_0 : i32, i32
  }
}

</mosaic_0001>

<bundles_post_ra>
// kernel: tpu_custom_call.1
= control target key start
LH: loop header
LB: loop body
LE: loop exit
PB: predicated region body
PF: predicated region fallthrough
CT: control target
= control target key end

     0   :  { %13 = vsyncpa [#allocation3], 0  ;;  %s2522_s0 = inlined_call_operand.hbm [shape: f32[16,20], index: 0, kind: input, shape index: {}]   ;;  %s2523_s1 = inlined_call_operand.hbm [shape: f32[20,48], index: 1, kind: input, shape index: {}]   ;;  %s2524_s2 = inlined_call_operand.hbm [shape: f32[16,20], index: 2, kind: input, shape index: {}]   ;;  %s2525_s3 = inlined_call_operand.hbm [shape: f32[20,40], index: 3, kind: input, shape index: {}]   ;;  %s2526_s4 = inlined_call_operand.hbm [shape: f32[40,40], index: 4, kind: input, shape index: {}]   ;;  %s2527_s5 = inlined_call_operand.vmem [shape: f32[16,16], index: 5, kind: input, shape index: {}]   ;;  %s2528_s6 = inlined_call_operand.hbm [shape: f32[16,16], index: 6, kind: input, shape index: {}]   ;;  %s2529_s7 = inlined_call_operand.hbm [shape: f32[10,20], index: 7, kind: input, shape index: {}]   ;;  %s2530_s8 = inlined_call_operand.hbm [shape: f32[16,20], index: 8, kind: output, shape index: {}]  }
   0x1   :  { %14 = vsyncpa [#allocation6], 0 }
   0x2   :  { %15 = vsyncpa [#allocation9], 0 }
   0x3   :  { %16 = vsyncpa [#allocation12], 0 }
   0x4   :  { %17 = vsyncpa [#allocation4], 0  ;;  %s2174_s27 = smov [#allocation5]   ;;  %s2175_s29 = smov [#allocation8]  }
   0x5   :  { %s35_s28 = sshll.u32 %s2174_s27, 4  ;;  %s59_s30 = sshll.u32 %s2175_s29, 4  ;;  %s36_s28 = int_to_ptr.vmem [resolvable:$true] %s35_s28  ;;  %s2239_s30 = int_to_ptr.vmem [resolvable:$true] %s59_s30 }
   0x6   :  { %s1988_s11 = scalar_lea.hbm %s2523_s1, 384 }
   0x7   :  { %p1989_p0 = scmp.ne.s32.totalorder %s2523_s1, %s1988_s11  ;;  %p1992_p1 = scmp.lt.u32.totalorder %s1988_s11, %s2523_s1 }
   0x9   :  { %p1994_p2 = pnand %p1992_p1, %p1989_p0 }
   0xb   :  { %1997 = shalt.err (!%p1994_p2)
}
   0xc   :  { %s1998_s16 = scalar_lea.vmem %s36_s28, 384  ;;  %p2003_p4 = scmp.lt.s32.totalorder %s36_s28, %s36_s28 }
   0xd   :  { %p1999_p3 = scmp.ne.s32.totalorder %s36_s28, %s1998_s16  ;;  %p2004_p5 = scmp.lt.s32.totalorder %s1998_s16, %s1998_s16 }
   0xf   :  { %p2005_p6 = por %p2004_p5, %p2003_p4 }
  0x11   :  { %p2006_p7 = pnand %p2005_p6, %p1999_p3 }
  0x13   :  { %2009 = shalt.err (!%p2006_p7)
}
  0x14   :  { %s2176_s17 = smov 128   ;;  %s2177_s18 = smov 8  }
  0x15   :  { %41 = dma.hbm_to_vmem [thread:$0]  %s2523_s1, 384, %s36_s28, [#allocation6], %s2176_s17, %s2176_s17, %s2177_s18  }
  0x16   :  { %s2010_s23 = scalar_lea.hbm %s2525_s3, 384 }
  0x17   :  { %p2011_p8 = scmp.ne.s32.totalorder %s2525_s3, %s2010_s23  ;;  %p2014_p9 = scmp.lt.u32.totalorder %s2010_s23, %s2525_s3 }
  0x19   :  { %p2016_p10 = pnand %p2014_p9, %p2011_p8 }
  0x1b   :  { %2019 = shalt.err (!%p2016_p10)
}
  0x1c   :  { %s2020_s29 = scalar_lea.vmem %s2239_s30, 384  ;;  %p2025_p12 = scmp.lt.s32.totalorder %s2239_s30, %s2239_s30 }
  0x1d   :  { %p2021_p11 = scmp.ne.s32.totalorder %s2239_s30, %s2020_s29  ;;  %p2026_p13 = scmp.lt.s32.totalorder %s2020_s29, %s2020_s29 }
  0x1f   :  { %p2027_p0 = por %p2026_p13, %p2025_p12 }
  0x21   :  { %p2028_p1 = pnand %p2027_p0, %p2021_p11 }
  0x23   :  { %2031 = shalt.err (!%p2028_p1)
}
  0x24   :  { %65 = dma.hbm_to_vmem [thread:$0]  %s2525_s3, 384, %s2239_s30, [#allocation9], %s2176_s17, %s2176_s17, %s2177_s18  }
  0x25   :  { %s2178_s9 = smov [#allocation11]   ;;  %s2179_s11 = smov [#allocation2]  }
  0x26   :  { %s85_s10 = sshll.u32 %s2178_s9, 4  ;;  %s23_s12 = sshll.u32 %s2179_s11, 4  ;;  %s86_s10 = int_to_ptr.vmem [resolvable:$true] %s85_s10  ;;  %s2276_s12 = int_to_ptr.vmem [resolvable:$true] %s23_s12 }
  0x27   :  { %s2032_s15 = scalar_lea.hbm %s2528_s6, 256 }
  0x28   :  { %p2033_p2 = scmp.ne.s32.totalorder %s2528_s6, %s2032_s15  ;;  %p2036_p3 = scmp.lt.u32.totalorder %s2032_s15, %s2528_s6 }
  0x2a   :  { %p2038_p4 = pnand %p2036_p3, %p2033_p2 }
  0x2c   :  { %2041 = shalt.err (!%p2038_p4)
}
  0x2d   :  { %s2042_s3 = scalar_lea.vmem %s86_s10, 256  ;;  %p2047_p6 = scmp.lt.s32.totalorder %s86_s10, %s86_s10 }
  0x2e   :  { %p2043_p5 = scmp.ne.s32.totalorder %s86_s10, %s2042_s3  ;;  %p2048_p7 = scmp.lt.s32.totalorder %s2042_s3, %s2042_s3 }
  0x30   :  { %p2049_p8 = por %p2048_p7, %p2047_p6 }
  0x32   :  { %p2050_p9 = pnand %p2049_p8, %p2043_p5 }
  0x34   :  { %2053 = shalt.err (!%p2050_p9)
}
  0x35   :  { %91 = dma.hbm_to_vmem [thread:$0]  %s2528_s6, 256, %s86_s10, [#allocation12], %s2176_s17, %s2176_s17, %s2177_s18  }
  0x36   :  { %s2054_s25 = scalar_lea.hbm %s2522_s0, 256 }
  0x37   :  { %p2055_p10 = scmp.ne.s32.totalorder %s2522_s0, %s2054_s25  ;;  %p2058_p11 = scmp.lt.u32.totalorder %s2054_s25, %s2522_s0 }
  0x39   :  { %p2060_p12 = pnand %p2058_p11, %p2055_p10 }
  0x3b   :  { %2063 = shalt.err (!%p2060_p12)
}
  0x3c   :  { %s2064_s28 = scalar_lea.vmem %s2276_s12, 256  ;;  %p2069_p0 = scmp.lt.s32.totalorder %s2276_s12, %s2276_s12 }
  0x3d   :  { %p2065_p13 = scmp.ne.s32.totalorder %s2276_s12, %s2064_s28  ;;  %p2070_p1 = scmp.lt.s32.totalorder %s2064_s28, %s2064_s28 }
  0x3f   :  { %p2071_p2 = por %p2070_p1, %p2069_p0 }
  0x41   :  { %p2072_p3 = pnand %p2071_p2, %p2065_p13 }
  0x43   :  { %2075 = shalt.err (!%p2072_p3)
}
  0x44   :  { %29 = dma.hbm_to_vmem [thread:$0]  %s2522_s0, 256, %s2276_s12, [#allocation3], %s2176_s17, %s2176_s17, %s2177_s18  }
  0x45   :  { %s2180_s10 = smov [#allocation7]   ;;  %s2181_s13 = smov [#allocation10]  }
  0x46   :  { %s47_s11 = sshll.u32 %s2180_s10, 4  ;;  %s71_s14 = sshll.u32 %s2181_s13, 4  ;;  %s48_s11 = int_to_ptr.vmem [resolvable:$true] %s47_s11  ;;  %s2313_s14 = int_to_ptr.vmem [resolvable:$true] %s71_s14 }
  0x47   :  { %s2076_s19 = scalar_lea.hbm %s2524_s2, 256 }
  0x48   :  { %p2077_p4 = scmp.ne.s32.totalorder %s2524_s2, %s2076_s19  ;;  %p2080_p5 = scmp.lt.u32.totalorder %s2076_s19, %s2524_s2 }
  0x4a   :  { %p2082_p6 = pnand %p2080_p5, %p2077_p4 }
  0x4c   :  { %2085 = shalt.err (!%p2082_p6)
}
  0x4d   :  { %s2086_s0 = scalar_lea.vmem %s48_s11, 256  ;;  %p2091_p8 = scmp.lt.s32.totalorder %s48_s11, %s48_s11 }
  0x4e   :  { %p2087_p7 = scmp.ne.s32.totalorder %s48_s11, %s2086_s0  ;;  %p2092_p9 = scmp.lt.s32.totalorder %s2086_s0, %s2086_s0 }
  0x50   :  { %p2093_p10 = por %p2092_p9, %p2091_p8 }
  0x52   :  { %p2094_p11 = pnand %p2093_p10, %p2087_p7 }
  0x54   :  { %2097 = shalt.err (!%p2094_p11)
}
  0x55   :  { %53 = dma.hbm_to_vmem [thread:$0]  %s2524_s2, 256, %s48_s11, [#allocation6], %s2176_s17, %s2176_s17, %s2177_s18  }
  0x56   :  { %s2098_s25 = scalar_lea.hbm %s2526_s4, 640 }
  0x57   :  { %p2099_p12 = scmp.ne.s32.totalorder %s2526_s4, %s2098_s25  ;;  %p2102_p13 = scmp.lt.u32.totalorder %s2098_s25, %s2526_s4 }
  0x59   :  { %p2104_p0 = pnand %p2102_p13, %p2099_p12 }
  0x5b   :  { %2107 = shalt.err (!%p2104_p0)
}
  0x5c   :  { %s2108_s28 = scalar_lea.vmem %s2313_s14, 640  ;;  %p2113_p2 = scmp.lt.s32.totalorder %s2313_s14, %s2313_s14 }
  0x5d   :  { %p2109_p1 = scmp.ne.s32.totalorder %s2313_s14, %s2108_s28  ;;  %p2114_p3 = scmp.lt.s32.totalorder %s2108_s28, %s2108_s28 }
  0x5f   :  { %p2115_p4 = por %p2114_p3, %p2113_p2 }
  0x61   :  { %p2116_p5 = pnand %p2115_p4, %p2109_p1 }
  0x63   :  { %2119 = shalt.err (!%p2116_p5)
}
  0x64   :  { %77 = dma.hbm_to_vmem [thread:$0]  %s2526_s4, 640, %s2313_s14, [#allocation9], %s2176_s17, %s2176_s17, %s2177_s18  }
  0x65   :  { %s2182_s9 = smov [#allocation13]   ;;  %s2120_s15 = scalar_lea.hbm %s2529_s7, 256 }
  0x66   :  { %s97_s10 = sshll.u32 %s2182_s9, 4  ;;  %p2121_p6 = scmp.ne.s32.totalorder %s2529_s7, %s2120_s15  ;;  %s98_s10 = int_to_ptr.vmem [resolvable:$true] %s97_s10 }
  0x67   :  { %p2124_p7 = scmp.lt.u32.totalorder %s2120_s15, %s2529_s7 }
  0x69   :  { %p2126_p8 = pnand %p2124_p7, %p2121_p6 }
  0x6b   :  { %2129 = shalt.err (!%p2126_p8)
}
  0x6c   :  { %s2130_s3 = scalar_lea.vmem %s98_s10, 256  ;;  %p2135_p10 = scmp.lt.s32.totalorder %s98_s10, %s98_s10 }
  0x6d   :  { %p2131_p9 = scmp.ne.s32.totalorder %s98_s10, %s2130_s3  ;;  %p2136_p11 = scmp.lt.s32.totalorder %s2130_s3, %s2130_s3 }
  0x6f   :  { %p2137_p12 = por %p2136_p11, %p2135_p10 }
  0x71   :  { %p2138_p13 = pnand %p2137_p12, %p2131_p9 }
  0x73   :  { %2141 = shalt.err (!%p2138_p13)
}
  0x74   :  { %103 = dma.hbm_to_vmem [thread:$0]  %s2529_s7, 256, %s98_s10, [#allocation12], %s2176_s17, %s2176_s17, %s2177_s18  }
  0x75   :  { %2164 = dma.done.wait [#allocation3], 256  }
  0x76   :  { %2165 = vsyncadd [#allocation3], 4294967040 }
  0x77   :  { %2166 = dma.done.wait [#allocation6], 640  }
  0x78   :  { %2167 = vsyncadd [#allocation6], 4294966656 }
  0x79   :  { %2168 = dma.done.wait [#allocation9], 1024  }
  0x7a   :  { %2169 = vsyncadd [#allocation9], 4294966272 }
  0x7b   :  { %2170 = dma.done.wait [#allocation12], 512  }
  0x7c   :  { %2171 = vsyncadd [#allocation12], 4294966784  ;;  %vm134_vm0 = vcmask 162816   ;;  %v131_v0 = vld [vmem:[#allocation5] sm:$0xff]  ;;  %v132_v1 = vld [vmem:[#allocation5 + $0x8] sm:$0xff]  ;;  %vm141_vm1 = vcmask 1043456  }
  0x7d   :  { %v1850_v2 = vpack.c.bf16 %v132_v1, %v131_v0  ;;  %v2365_v3 = vld [vmem:[#allocation2] sm:$0xff]  ;;  %v2370_v5 = vld [vmem:[#allocation2 + $0x8] sm:$0xff]  ;;  %vm226_vm2 = vcmask 64512   ;;  %s2183_s7 = smov 120   ;;  %s2184_s30 = smov 112   ;;  %vm314_vm4 = vcmask 130048  }
  0x7e   :  { %v133_v4 = vld [vmem:[#allocation5 + $0x10] sm:$0xf]  ;;  %1738 = vmatprep.mubr.msk.f32.mxu0 %vm134_vm0, %v2365_v3  ;;  %s2185_s0 = smov 104   ;;  %vm1855_vm3 = vmpackc.low %vm226_vm2, %vm226_vm2  ;;  %v130_v20 = vld [vmem:[%s2527_s5 + $0x8] sm:$0xff]  ;;  %s2187_s25 = smov 88   ;;  %vm2190_vm9 = vmmov 1  }
  0x7f   :  { %1851 = vmatprep.subr.bf16.mxu0 %v1850_v2  ;;  %v129_v23 = vld [vmem:[%s2527_s5] sm:$0xff]  ;;  %s2186_s5 = smov 96   ;;  %s2188_s26 = smov 20  }
  0x80   :  { %1853 = vmatpush3.bf16.msra.mxu0 %v1850_v2  ;;  %s2189_s27 = smov 108   ;;  %s2193_s29 = smov [#allocation14]  }
  0x81   :  { %1736 = vmatprep.subr.msk.mxu0 %vm141_vm1, %v133_v4  ;;  %s1626_s1 = sshll.u32 %s2193_s29, 4  ;;  %s1627_s1 = int_to_ptr.vmem [resolvable:$true] %s1626_s1 }
  0x82   :  { %s2142_s28 = scalar_lea.vmem %s1627_s1, 256  ;;  %p2147_p1 = scmp.lt.s32.totalorder %s1627_s1, %s1627_s1 }
  0x83   :  { %p2143_p0 = scmp.ne.s32.totalorder %s1627_s1, %s2142_s28  ;;  %p2148_p2 = scmp.lt.s32.totalorder %s2142_s28, %s2142_s28 }
  0x84   :  { %1737 = vmatpush3.msk.msra.mxu0 %vm141_vm1, %v133_v4 }
  0x85   :  { %1739 = vmatmul.mubr.msk.f32.vlgmr.msra.gmra.mrb[0].mxu0 %vm134_vm0, %v2370_v5  ;;  %p2149_p3 = por %p2148_p2, %p2147_p1 }
  0x87   :  { %p2150_p4 = pnand %p2149_p3, %p2143_p0 }
 0x158   :  { %v1740_v6 = vpop.f32.mrb[0].mxu0 }
 0x159   :  { %v211_v7 = vpop.f32.mrb[1].mxu0 }
 0x15a   :  { %424 = vrot.lane.b32.xlu1 %v211_v7, %s2183_s7  ;;  %1745 = vmatprep.mubr.msk.f32.mxu0 %vm226_vm2, %v211_v7  ;;  %v2376_v8 = vpack.i.bf16 %v1740_v6, %v211_v7 }
 0x15c   :  { %1945 = vrot.lane.b32.xlu0 %v2376_v8, %s2184_s30 }
 0x15e   :  { %426 = vrot.lane.b32.xlu1 %v1740_v6, %s2183_s7 }
 0x160   :  { %1950 = vrot.lane.b32.xlu0 %v2376_v8, %s2185_s0 }
 0x1cc   :  { %v425_v9 = vpop.permute.xlu1 %424 }
 0x1cd   :  { %1759 = vmatprep.mubr.msk.f32.mxu1 %vm226_vm2, %v425_v9 }
 0x1ce   :  { %v1946_v10 = vpop.permute.xlu0 %1945 }
 0x1cf   :  { %v1948_v11 = vunpack.i.h.bf16 %v1946_v10  ;;  %v1947_v12 = vunpack.i.l.bf16 %v1946_v10 }
 0x1d0   :  { %v427_v18 = vpop.permute.xlu1 %426 }
 0x1d1   :  { %v1854_v13 = vpack.c.bf16 %v1948_v11, %v1947_v12 }
 0x1d2   :  { %v1951_v14 = vpop.permute.xlu0 %1950 }
 0x1d3   :  { %v1953_v15 = vunpack.i.h.bf16 %v1951_v14  ;;  %v1952_v16 = vunpack.i.l.bf16 %v1951_v14  ;;  %1856 = vmatprep.subr.msk.bf16.mxu0 %vm1855_vm3, %v1854_v13 }
 0x1d4   :  { %1859 = vmatpush3.bf16.xpose.msk.msra.mxu0 %vm1855_vm3, %v1854_v13 }
 0x1d5   :  { %v1864_v17 = vpack.c.bf16 %v1953_v15, %v1952_v16  ;;  %v638_v15 = vld [vmem:[#allocation7] sm:$0xff]  ;;  %v639_v16 = vld [vmem:[#allocation7 + $0x8] sm:$0xff] }
 0x1d7   :  { %1866 = vmatprep.subr.msk.bf16.mxu1 %vm1855_vm3, %v1864_v17 }
 0x1d8   :  { %1869 = vmatpush3.bf16.xpose.msk.msra.mxu1 %vm1855_vm3, %v1864_v17  ;;  %v1874_v17 = vpack.c.bf16 %v639_v16, %v638_v15  ;;  %vm1374_vm3 = vcmask 326656  }
 0x1db   :  { %1746 = vmatmul.mubr.msk.f32.vlgmr.msra.gmra.mrb[2].mxu0 %vm226_vm2, %v1740_v6 }
 0x1df   :  { %1760 = vmatmul.mubr.msk.f32.vlgmr.msra.gmra.mrb[0].mxu1 %vm226_vm2, %v427_v18 }
 0x2ae   :  { %v1747_v19 = vpop.f32.mrb[2].mxu0 }
 0x2af   :  { %v311_v21 = vmul.f32 0.35355338, %v1747_v19  ;;  %v301_v22 = vpop.f32.mrb[3].mxu0 }
 0x2b0   :  { %v310_v24 = vmul.f32 0.35355338, %v301_v22 }
 0x2b1   :  { %v313_v25 = vadd.f32 %v311_v21, %v130_v20 }
 0x2b2   :  { %v1761_v26 = vpop.f32.mrb[0].mxu1  ;;  %v312_v27 = vadd.f32 %v310_v24, %v129_v23 }
 0x2b3   :  { %v506_v28 = vpop.f32.mrb[1].mxu1  ;;  %v318_v29 = vsel %vm314_vm4, %v313_v25, -inf  ;;  %v516_v30 = vmul.f32 0.35355338, %v1761_v26  ;;  %v640_v26 = vlaneseq }
 0x2b4   :  { %v515_v31 = vmul.f32 0.35355338, %v506_v28  ;;  %319 = vmax.xlane.f32.xlu1 %v318_v29  ;;  %v315_v32 = vsel %vm314_vm4, %v312_v27, -inf  ;;  %v2414_v29 = vld [vmem:[#allocation13] sm:$0xff] }
 0x2b5   :  { %316 = vmax.xlane.f32.xlu0 %v315_v32  ;;  %v518_v35 = vadd.f32 %v516_v30, %v130_v20 }
 0x2b6   :  { %v517_v33 = vadd.f32 %v515_v31, %v129_v23 }
 0x2b7   :  { %v522_v36 = vsel %vm314_vm4, %v518_v35, -inf }
 0x2b8   :  { %v519_v34 = vsel %vm314_vm4, %v517_v33, -inf }
 0x2b9   :  { %520 = vmax.xlane.f32.xlu0 %v519_v34 }
 0x2bd   :  { %523 = vmax.xlane.f32.xlu0 %v522_v36 }
 0x341   :  { %v320_v37 = vpop.xlane.xlu1 %319 }
 0x342   :  { %v322_v38 = vsub.f32 %v313_v25, %v320_v37  ;;  %v317_v39 = vpop.xlane.xlu0 %316 }
 0x343   :  { %v321_v40 = vsub.f32 %v312_v27, %v317_v39  ;;  %v2411_v27 = vshrl.u32 %v640_v26, 7 }
 0x344   :  { %v325_v41 = vmul.f32 1.442695, %v322_v38 }
 0x345   :  { %v323_v42 = vmul.f32 1.442695, %v321_v40  ;;  %v642_v28 = vsub.s32 0, %v2411_v27 }
 0x346   :  { %1964 = vpow2.f32 %v325_v41  ;;  %v521_v43 = vpop.xlane.xlu0 %520 }
 0x347   :  { %1966 = vpow2.f32 %v323_v42  ;;  %v525_v44 = vsub.f32 %v517_v33, %v521_v43  ;;  %v643_v30 = vrot.slane %v2414_v29, %v642_v28 }
 0x349   :  { %v527_v45 = vmul.f32 1.442695, %v525_v44 }
 0x34a   :  { %v524_v46 = vpop.xlane.xlu0 %523 }
 0x34b   :  { %1968 = vpow2.f32 %v527_v45  ;;  %v526_v47 = vsub.f32 %v518_v35, %v524_v46 }
 0x34d   :  { %v529_v48 = vmul.f32 1.442695, %v526_v47  ;;  %v774_v47 = vld [vmem:[#allocation8 + $0x10] sm:$0xf] }
 0x34f   :  { %1970 = vpow2.f32 %v529_v48  ;;  %v782_v48 = vsel %vm141_vm1, %v774_v47, 0 }
 0x350   :  { %v1965_v49 = vpop.eup %1964 }
 0x351   :  { %v1967_v50 = vpop.eup %1966  ;;  %v330_v51 = vsel %vm314_vm4, %v1965_v49, 0.0 }
 0x352   :  { %331 = vadd.xlane.f32.xlu0 %v330_v51  ;;  %v327_v52 = vsel %vm314_vm4, %v1967_v50, 0.0 }
 0x353   :  { %328 = vadd.xlane.f32.xlu1 %v327_v52 }
 0x355   :  { %v1969_v53 = vpop.eup %1968 }
 0x356   :  { %v531_v54 = vsel %vm314_vm4, %v1969_v53, 0.0 }
 0x357   :  { %532 = vadd.xlane.f32.xlu1 %v531_v54 }
 0x359   :  { %v1971_v55 = vpop.eup %1970 }
 0x35a   :  { %v534_v56 = vsel %vm314_vm4, %v1971_v55, 0.0 }
 0x35b   :  { %535 = vadd.xlane.f32.xlu0 %v534_v56 }
 0x368   :  { %1955 = vrot.lane.b32.xlu1 %v2376_v8, %s2186_s5 }
 0x371   :  { %1960 = vrot.lane.b32.xlu0 %v2376_v8, %s2187_s25 }
 0x3df   :  { %v332_v57 = vpop.xlane.xlu0 %331 }
 0x3e0   :  { %v329_v58 = vpop.xlane.xlu1 %328 }
 0x3e1   :  { %1972 = vrcp.f32 %v329_v58 }
 0x3e2   :  { %1974 = vrcp.f32 %v332_v57 }
 0x3e4   :  { %v533_v59 = vpop.xlane.xlu1 %532 }
 0x3e5   :  { %1976 = vrcp.f32 %v533_v59 }
 0x3e8   :  { %v1956_v60 = vpop.permute.xlu1 %1955  ;;  %v536_v61 = vpop.xlane.xlu0 %535 }
 0x3e9   :  { %v1958_v62 = vunpack.i.h.bf16 %v1956_v60  ;;  %v1957_v63 = vunpack.i.l.bf16 %v1956_v60  ;;  %1978 = vrcp.f32 %v536_v61 }
 0x3eb   :  { %v1973_v0 = vpop.eup %1972  ;;  %v1860_v1 = vpack.c.bf16 %v1958_v62, %v1957_v63 }
 0x3ec   :  { %v1975_v2 = vpop.eup %1974  ;;  %v1961_v4 = vpop.permute.xlu0 %1960  ;;  %v334_v6 = vmul.f32 %v1973_v0, %v1967_v50  ;;  %v773_v50 = vld [vmem:[#allocation8 + $0x8] sm:$0xff] }
 0x3ed   :  { %v1963_v7 = vunpack.i.h.bf16 %v1961_v4  ;;  %v1962_v9 = vunpack.i.l.bf16 %v1961_v4  ;;  %1861 = vmatprep.subr.bf16.mxu0 %v1860_v1  ;;  %v336_v10 = vmul.f32 %v1975_v2, %v1965_v49  ;;  %v772_v49 = vld [vmem:[#allocation8] sm:$0xff]  ;;  %v788_v52 = vand.u32 4294901760, %v773_v50  ;;  %v2435_v4 = vld [vmem:[#allocation13 + $0x8] sm:$0x3] }
 0x3ee   :  { %1863 = vmatpush3.bf16.msra.mxu0 %v1860_v1  ;;  %1752 = vmatprep.mubr.msk.f32.mxu0 %vm314_vm4, %v334_v6  ;;  %v785_v51 = vand.u32 4294901760, %v772_v49  ;;  %v754_v2 = vsub.s32 1, %v2411_v27 }
 0x3ef   :  { %v1977_v8 = vpop.eup %1976  ;;  %v1870_v11 = vpack.c.bf16 %v1963_v7, %v1962_v9  ;;  %v881_v56 = vsub.f32 %v773_v50, %v788_v52 }
 0x3f0   :  { %v538_v12 = vmul.f32 %v1977_v8, %v1969_v53  ;;  %v2424_v53 = vand.u32 4294901760, %v782_v48  ;;  %v2426_v54 = vpack.c.bf16 %v788_v52, %v785_v51  ;;  %v1308_v6 = vrot.slane %v2435_v4, %v754_v2  ;;  %v1369_v52 = vld [vmem:[#allocation10] sm:$0xff] }
 0x3f1   :  { %1753 = vmatmul.mubr.msk.f32.vlgmr.msra.gmra.mrb[4].mxu0 %vm314_vm4, %v336_v10  ;;  %1871 = vmatprep.subr.bf16.mxu0 %v1870_v11  ;;  %v882_v58 = vand.u32 4294901760, %v881_v56 }
 0x3f2   :  { %1873 = vmatpush3.bf16.msra.mxu0 %v1870_v11  ;;  %1766 = vmatprep.mubr.msk.f32.mxu0 %vm314_vm4, %v538_v12 }
 0x3f3   :  { %v1979_v13 = vpop.eup %1978  ;;  %1875 = vmatprep.subr.bf16.mxu0 %v1874_v17  ;;  %1879 = vmatprep.subr.bf16.mxu1 %v2426_v54  ;;  %v883_v60 = vsub.f32 %v881_v56, %v882_v58 }
 0x3f4   :  { %v540_v14 = vmul.f32 %v1979_v13, %v1971_v55  ;;  %1881 = vmatpush3.bf16.msra.mxu1 %v2426_v54  ;;  %v874_v55 = vsub.f32 %v772_v49, %v785_v51  ;;  %v760_v13 = vsub.s32 2, %v2411_v27 }
 0x3f5   :  { %1780 = vmatprep.subr.mxu1 %v2424_v53  ;;  %v884_v62 = vand.u32 4294901760, %v883_v60 }
 0x3f6   :  { %1767 = vmatmul.mubr.msk.f32.vlgmr.msra.gmra.mrb[6].mxu0 %vm314_vm4, %v540_v14  ;;  %v875_v57 = vand.u32 4294901760, %v874_v55  ;;  %v1886_v0 = vpack.c.bf16 %v881_v56, %v874_v55  ;;  %v755_v14 = vrot.slane %v2414_v29, %v754_v2  ;;  %v761_v16 = vrot.slane %v2414_v29, %v760_v13 }
 0x3f7   :  { %1877 = vmatpush3.bf16.msra.mxu0 %v1874_v17 }
 0x3f8   :  { %1781 = vmatpush3.msra.mxu1 %v2424_v53  ;;  %v876_v59 = vsub.f32 %v874_v55, %v875_v57  ;;  %v2432_v1 = vpack.c.bf16 %v882_v58, %v875_v57  ;;  %v1370_v55 = vld [vmem:[#allocation10 + $0x8] sm:$0xff]  ;;  %v1372_v57 = vld [vmem:[#allocation10 + $0x18] sm:$0xff] }
 0x3f9   :  { %v1902_v56 = vpack.c.bf16 %v1370_v55, %v1369_v52 }
 0x3fa   :  { %v877_v61 = vand.u32 4294901760, %v876_v59 }
 0x3fb   :  { %1903 = vmatprep.subr.bf16.mxu0 %v1902_v56 }
 0x3fc   :  { %v1882_v63 = vpack.c.bf16 %v884_v62, %v877_v61 }
 0x3fe   :  { %1883 = vmatprep.subr.bf16.mxu1 %v1882_v63 }
 0x4c4   :  { %v1754_v18 = vpop.f32.mrb[4].mxu0 }
 0x4c5   :  { %v415_v19 = vpop.f32.mrb[5].mxu0 }
 0x4c9   :  { %v1768_v20 = vpop.f32.mrb[6].mxu0 }
 0x4ca   :  { %v619_v21 = vpop.f32.mrb[7].mxu0 }
 0x4cb   :  { %630 = vrot.lane.b32.xlu1 %v619_v21, %s2177_s18 }
 0x4cf   :  { %632 = vrot.lane.b32.xlu1 %v1768_v20, %s2177_s18 }
 0x53d   :  { %v631_v22 = vpop.permute.xlu1 %630 }
 0x53e   :  { %v636_v23 = vsel %vm226_vm2, %v415_v19, %v631_v22 }
 0x53f   :  { %1773 = vmatprep.mubr.msk.f32.mxu0 %vm314_vm4, %v636_v23 }
 0x541   :  { %v633_v24 = vpop.permute.xlu1 %632 }
 0x542   :  { %v637_v25 = vsel %vm226_vm2, %v1754_v18, %v633_v24 }
 0x543   :  { %1774 = vmatmul.mubr.msk.f32.vlgmr.msra.gmra.mrb[8].mxu0 %vm314_vm4, %v637_v25 }
 0x544   :  { %1905 = vmatpush3.bf16.msra.mxu0 %v1902_v56 }
 0x616   :  { %v1775_v31 = vpop.f32.mrb[8].mxu0 }
 0x617   :  { %v722_v32 = vadd.f32 %v1775_v31, %v643_v30  ;;  %v716_v33 = vpop.f32.mrb[9].mxu0 }
 0x618   :  { %v717_v34 = vadd.f32 %v716_v33, %v643_v30 }
 0x619   :  { %v728_v35 = vsel %vm134_vm0, %v722_v32, 0.0 }
 0x61a   :  { %729 = vadd.xlane.f32.xlu1 %v728_v35  ;;  %v725_v36 = vsel %vm134_vm0, %v717_v34, 0.0 }
 0x61b   :  { %726 = vadd.xlane.f32.xlu0 %v725_v36 }
 0x62b   :  { %1310 = vrot.lane.b32.xlu1 %v1308_v6, %s2188_s26 }
 0x6a7   :  { %v730_v37 = vpop.xlane.xlu1 %729 }
 0x6a8   :  { %v733_v38 = vmul.f32 0.05, %v730_v37  ;;  %v727_v39 = vpop.xlane.xlu0 %726 }
 0x6a9   :  { %v732_v40 = vmul.f32 0.05, %v727_v39 }
 0x6aa   :  { %v735_v41 = vsub.f32 %v722_v32, %v733_v38  ;;  %v888_v32 = vsub.f32 %v782_v48, %v2424_v53 }
 0x6ab   :  { %v734_v42 = vsub.f32 %v717_v34, %v732_v40 }
 0x6ac   :  { %v737_v45 = vmul.f32 %v735_v41, %v735_v41 }
 0x6ad   :  { %v736_v43 = vmul.f32 %v734_v42, %v734_v42 }
 0x6ae   :  { %v741_v46 = vsel %vm134_vm0, %v737_v45, 0.0 }
 0x6af   :  { %v738_v44 = vsel %vm134_vm0, %v736_v43, 0.0 }
 0x6b0   :  { %739 = vadd.xlane.f32.xlu0 %v738_v44 }
 0x6b4   :  { %742 = vadd.xlane.f32.xlu0 %v741_v46 }
 0x73d   :  { %v740_v7 = vpop.xlane.xlu0 %739 }
 0x73e   :  { %v744_v9 = vmul.f32 0.05, %v740_v7 }
 0x740   :  { %v746_v8 = vadd.f32 1e-05, %v744_v9 }
 0x741   :  { %v743_v10 = vpop.xlane.xlu0 %742 }
 0x742   :  { %1980 = vrsqrt.f32 %v746_v8  ;;  %v745_v11 = vmul.f32 0.05, %v743_v10 }
 0x744   :  { %v747_v12 = vadd.f32 1e-05, %v745_v11 }
 0x746   :  { %1982 = vrsqrt.f32 %v747_v12  ;;  %v2192_v12 = vmov 0.0  }
 0x74c   :  { %v1981_v15 = vpop.eup %1980 }
 0x74d   :  { %v750_v17 = vmul.f32 %v1981_v15, %v734_v42 }
 0x74f   :  { %v756_v18 = vmul.f32 %v755_v14, %v750_v17 }
 0x750   :  { %v1983_v19 = vpop.eup %1982 }
 0x751   :  { %v762_v20 = vadd.f32 %v761_v16, %v756_v18  ;;  %v751_v21 = vmul.f32 %v1983_v19, %v735_v41 }
 0x753   :  { %vm764_vm5 = vcmp.ge.f32.partialorder %v762_v20, 0.0  ;;  %v766_v22 = vmul.f32 0.01, %v762_v20  ;;  %v757_v23 = vmul.f32 %v755_v14, %v751_v21 }
 0x755   :  { %v763_v24 = vadd.f32 %v761_v16, %v757_v23  ;;  %v768_v25 = vsel %vm764_vm5, %v762_v20, %v766_v22 }
 0x756   :  { %v2443_v26 = vadd.f32 %v768_v25, %v2365_v3  ;;  %v889_v3 = vand.u32 4294901760, %v888_v32 }
 0x757   :  { %vm765_vm6 = vcmp.ge.f32.partialorder %v763_v24, 0.0  ;;  %v767_v30 = vmul.f32 0.01, %v763_v24 }
 0x758   :  { %v776_v31 = vsel %vm134_vm0, %v2443_v26, 0  ;;  %v890_v44 = vsub.f32 %v888_v32, %v889_v3 }
 0x759   :  { %v769_v33 = vsel %vm765_vm6, %v763_v24, %v767_v30  ;;  %v852_v34 = vand.u32 4294901760, %v776_v31  ;;  %v1488_v30 = vld [vmem:[#allocation11] sm:$0xff] }
 0x75a   :  { %v2449_v35 = vadd.f32 %v769_v33, %v2370_v5  ;;  %v891_v47 = vand.u32 4294901760, %v890_v44  ;;  %v1311_v5 = vpop.permute.xlu1 %1310 }
 0x75b   :  { %v853_v36 = vsub.f32 %v776_v31, %v852_v34 }
 0x75c   :  { %v779_v37 = vsel %vm134_vm0, %v2449_v35, 0 }
 0x75d   :  { %v854_v38 = vand.u32 4294901760, %v853_v36  ;;  %v862_v39 = vand.u32 4294901760, %v779_v37 }
 0x75f   :  { %v855_v40 = vsub.f32 %v853_v36, %v854_v38  ;;  %v863_v41 = vsub.f32 %v779_v37, %v862_v39 }
 0x761   :  { %v856_v42 = vand.u32 4294901760, %v855_v40  ;;  %v864_v43 = vand.u32 4294901760, %v863_v41 }
 0x763   :  { %1782 = vmatprep.mubr.f32.mxu1 %v856_v42  ;;  %v865_v45 = vsub.f32 %v863_v41, %v864_v43 }
 0x765   :  { %v866_v46 = vand.u32 4294901760, %v865_v45 }
 0x767   :  { %1783 = vmatmul.mubr.f32.vlgmr.msra.gmra.mrb[2].mxu1 %v866_v46 }
 0x768   :  { %1885 = vmatpush3.bf16.msra.mxu1 %v1882_v63  ;;  %1791 = vmatprep.mubr.f32.mxu1 %v852_v34 }
 0x769   :  { %1789 = vmatprep.subr.mxu1 %v891_v47 }
 0x76c   :  { %1790 = vmatpush3.msra.mxu1 %v891_v47 }
 0x76d   :  { %1887 = vmatprep.subr.bf16.mxu1 %v1886_v0 }
 0x76f   :  { %1792 = vmatmul.mubr.f32.vlgmr.msra.gmra.mrb[2].mxu1 %v862_v39 }
 0x770   :  { %1889 = vmatpush3.bf16.msra.mxu1 %v1886_v0  ;;  %1800 = vmatprep.mubr.f32.mxu1 %v853_v36 }
 0x771   :  { %1798 = vmatprep.subr.mxu1 %v888_v32 }
 0x774   :  { %1799 = vmatpush3.msra.mxu1 %v888_v32 }
 0x775   :  { %1891 = vmatprep.subr.bf16.mxu1 %v2426_v54 }
 0x777   :  { %1801 = vmatmul.mubr.f32.vlgmr.msra.gmra.mrb[2].mxu1 %v863_v41 }
 0x778   :  { %1893 = vmatpush3.bf16.msra.mxu1 %v2426_v54  ;;  %1809 = vmatprep.mubr.f32.mxu1 %v854_v38  ;;  %v1458_v38 = vsub.s32 5, %v2411_v27 }
 0x779   :  { %1807 = vmatprep.subr.mxu1 %v2424_v53 }
 0x77c   :  { %1808 = vmatpush3.msra.mxu1 %v2424_v53 }
 0x77d   :  { %1895 = vmatprep.subr.bf16.mxu1 %v2432_v1 }
 0x77f   :  { %1810 = vmatmul.mubr.f32.vlgmr.msra.gmra.mrb[2].mxu1 %v864_v43 }
 0x780   :  { %1897 = vmatpush3.bf16.msra.mxu1 %v2432_v1  ;;  %1818 = vmatprep.mubr.f32.mxu1 %v852_v34  ;;  %v1373_v1 = vld [vmem:[#allocation10 + $0x20] sm:$0xff] }
 0x781   :  { %1816 = vmatprep.subr.mxu1 %v889_v3 }
 0x784   :  { %1817 = vmatpush3.msra.mxu1 %v889_v3 }
 0x785   :  { %1899 = vmatprep.subr.bf16.mxu1 %v2426_v54 }
 0x787   :  { %1819 = vmatmul.mubr.f32.vlgmr.msra.gmra.mrb[2].mxu1 %v862_v39 }
 0x788   :  { %1901 = vmatpush3.bf16.msra.mxu1 %v2426_v54  ;;  %1827 = vmatprep.mubr.f32.mxu1 %v852_v34  ;;  %v1302_v54 = vrot.slane %v2435_v4, %v642_v28  ;;  %v2191_v28 = vmov 0   ;;  %v1468_v4 = vsub.s32 6, %v2411_v27 }
 0x789   :  { %1825 = vmatprep.subr.mxu1 %v2424_v53 }
 0x78a   :  { %v1469_v7 = vrot.slane %v2414_v29, %v1468_v4 }
 0x78c   :  { %1826 = vmatpush3.msra.mxu1 %v2424_v53  ;;  %v1371_v53 = vld [vmem:[#allocation10 + $0x10] sm:$0xff] }
 0x78d   :  { %v1906_v58 = vpack.c.bf16 %v1372_v57, %v1371_v53 }
 0x78f   :  { %1828 = vmatmul.mubr.f32.vlgmr.msra.gmra.mrb[2].mxu1 %v862_v39  ;;  %1907 = vmatprep.subr.bf16.mxu0 %v1906_v58  ;;  %v1459_v39 = vrot.slane %v2414_v29, %v1458_v38 }
 0x790   :  { %1909 = vmatpush3.bf16.msra.mxu0 %v1906_v58 }
 0x791   :  { %1838 = vmatprep.subr.mxu0 %v1373_v1 }
 0x794   :  { %1839 = vmatpush3.msra.mxu0 %v1373_v1 }
 0x862   :  { %v1829_v48 = vpop.f32.mrb[2].mxu1 }
 0x863   :  { %v1314_v49 = vadd.f32 %v1829_v48, %v1311_v5  ;;  %v1289_v50 = vpop.f32.mrb[3].mxu1  ;;  %v1304_v59 = vadd.f32 %v1829_v48, %v1302_v54 }
 0x864   :  { %v1313_v51 = vadd.f32 %v1311_v5, %v1289_v50  ;;  %v1303_v60 = vadd.f32 %v1302_v54, %v1289_v50  ;;  %v1492_v50 = vsub.s32 7, %v2411_v27 }
 0x865   :  { %1319 = vrot.lane.b32.xlu1 %v1314_v49, %s2189_s27 }
 0x866   :  { %1317 = vrot.lane.b32.xlu0 %v1313_v51, %s2189_s27 }
 0x8d7   :  { %v1320_v61 = vpop.permute.xlu1 %1319 }
 0x8d8   :  { %v1324_v62 = vmax.f32 %v1304_v59, %v1320_v61  ;;  %v1318_v63 = vpop.permute.xlu0 %1317 }
 0x8d9   :  { %v1323_v0 = vmax.f32 %v1303_v60, %v1318_v63 }
 0x8da   :  { %vm1326_vm7 = vcmp.eq.f32.partialorder %v1304_v59, %v1324_v62  ;;  %1335 = vrot.lane.b32.xlu1 %v1324_v62, %s2188_s26 }
 0x8db   :  { %vm1325_vm8 = vcmp.eq.f32.partialorder %v1303_v60, %v1323_v0  ;;  %vm1342_vm10 = vmxor %vm1326_vm7, %vm2190_vm9  ;;  %v1659_v14 = vsel %vm1326_vm7, 1.0, %v2192_v12 }
 0x8dc   :  { %v1344_v2 = vsel %vm1342_vm10, 1, %v2191_v28  ;;  %vm1341_vm11 = vmxor %vm1325_vm8, %vm2190_vm9  ;;  %v1658_v13 = vsel %vm1325_vm8, 1.0, %v2192_v12  ;;  %v1358_v21 = vmul.f32 %v1659_v14, %v2449_v35 }
 0x8dd   :  { %1347 = vrot.lane.b32.xlu0 %v1344_v2, %s2188_s26  ;;  %v1343_v6 = vsel %vm1341_vm11, 1, %v2191_v28  ;;  %v1357_v17 = vmul.f32 %v1658_v13, %v2443_v26 }
 0x8de   :  { %1333 = vrot.lane.b32.xlu1 %v1323_v0, %s2188_s26 }
 0x8e1   :  { %1345 = vrot.lane.b32.xlu0 %v1343_v6, %s2188_s26 }
 0x8e2   :  { %1359 = vrot.lane.b32.xlu1 %v2443_v26, %s2188_s26 }
 0x8e5   :  { %1361 = vrot.lane.b32.xlu0 %v2449_v35, %s2188_s26 }
 0x8e6   :  { %1471 = vrot.lane.b32.xlu1 %v1469_v7, %s2188_s26 }
 0x94c   :  { %v1336_v9 = vpop.permute.xlu1 %1335 }
 0x94d   :  { %vm1340_vm13 = vcmp.eq.f32.partialorder %v1314_v49, %v1336_v9  ;;  %v1489_v49 = vld [vmem:[#allocation11 + $0x8] sm:$0xff] }
 0x94f   :  { %v1348_v8 = vpop.permute.xlu0 %1347 }
 0x950   :  { %v1334_v10 = vpop.permute.xlu1 %1333  ;;  %vm1350_vm12 = vcmp.ne.s32.totalorder %v1348_v8, 0  ;;  %v1603_v8 = vsub.s32 3, %v2411_v27 }
 0x951   :  { %vm1352_vm14 = vmand %vm1340_vm13, %vm1350_vm12  ;;  %vm1339_vm15 = vcmp.eq.f32.partialorder %v1313_v51, %v1334_v10  ;;  %v1493_v51 = vrot.slane %v2414_v29, %v1492_v50  ;;  %v1609_v10 = vsub.s32 4, %v2411_v27 }
 0x952   :  { %v1661_v19 = vsel %vm1352_vm14, 1.0, %v2192_v12 }
 0x953   :  { %v1346_v11 = vpop.permute.xlu0 %1345 }
 0x954   :  { %vm1349_vm1 = vcmp.ne.s32.totalorder %v1346_v11, 0  ;;  %v1360_v15 = vpop.permute.xlu1 %1359  ;;  %v1604_v11 = vrot.slane %v2414_v29, %v1603_v8 }
 0x955   :  { %vm1351_vm2 = vmand %vm1339_vm15, %vm1349_vm1 }
 0x956   :  { %v1660_v16 = vsel %vm1351_vm2, 1.0, %v2192_v12 }
 0x957   :  { %v1365_v18 = vmul.f32 %v1660_v16, %v1360_v15  ;;  %v1362_v20 = vpop.permute.xlu0 %1361 }
 0x958   :  { %v1366_v22 = vmul.f32 %v1661_v19, %v1362_v20  ;;  %v1472_v25 = vpop.permute.xlu1 %1471 }
 0x959   :  { %v1367_v23 = vsel %vm134_vm0, %v1357_v17, %v1365_v18 }
 0x95a   :  { %v1368_v24 = vsel %vm134_vm0, %v1358_v21, %v1366_v22  ;;  %1840 = vmatprep.mubr.msk.f32.mxu0 %vm1374_vm3, %v1367_v23 }
 0x95b   :  { %1841 = vmatmul.mubr.msk.f32.vlgmr.msra.gmra.mrb[10].mxu0 %vm1374_vm3, %v1368_v24 }
 0x95c   :  { %1847 = vmatprep.mubr.msk.f32.mxu0 %vm314_vm4, %v1488_v30 }
 0xa2e   :  { %v1842_v31 = vpop.f32.mrb[10].mxu0 }
 0xa2f   :  { %v1475_v32 = vadd.f32 %v1842_v31, %v1472_v25  ;;  %v1447_v33 = vpop.f32.mrb[11].mxu0  ;;  %v1461_v3 = vadd.f32 %v1842_v31, %v1459_v39 }
 0xa30   :  { %v1474_v34 = vadd.f32 %v1472_v25, %v1447_v33  ;;  %v1460_v40 = vadd.f32 %v1459_v39, %v1447_v33 }
 0xa31   :  { %v1477_v36 = vmul.f32 %v1661_v19, %v1475_v32  ;;  %v1463_v41 = vmul.f32 %v1659_v14, %v1461_v3  ;;  %v1610_v14 = vrot.slane %v2414_v29, %v1609_v10 }
 0xa32   :  { %v1476_v37 = vmul.f32 %v1660_v16, %v1474_v34  ;;  %v1462_v42 = vmul.f32 %v1658_v13, %v1460_v40 }
 0xa33   :  { %1482 = vrot.lane.b32.xlu1 %v1477_v36, %s2189_s27  ;;  %v1465_v43 = vadd.f32 %v1463_v41, %v2449_v35 }
 0xa34   :  { %1480 = vrot.lane.b32.xlu0 %v1476_v37, %s2189_s27  ;;  %v1464_v45 = vadd.f32 %v1462_v42, %v2443_v26 }
 0xaa5   :  { %v1483_v44 = vpop.permute.xlu1 %1482 }
 0xaa6   :  { %v1487_v46 = vadd.f32 %v1483_v44, %v1465_v43  ;;  %v1481_v47 = vpop.permute.xlu0 %1480 }
 0xaa7   :  { %v1486_v5 = vadd.f32 %v1481_v47, %v1464_v45 }
 0xaa9   :  { %v1910_v48 = vpack.c.bf16 %v1487_v46, %v1486_v5 }
 0xaab   :  { %1911 = vmatprep.subr.bf16.mxu0 %v1910_v48 }
 0xaac   :  { %1913 = vmatpush3.bf16.msra.mxu0 %v1910_v48 }
 0xaaf   :  { %1848 = vmatmul.mubr.msk.f32.vlgmr.msra.gmra.mrb[12].mxu0 %vm314_vm4, %v1489_v49 }
 0xb82   :  { %v1849_v52 = vpop.f32.mrb[12].mxu0 }
 0xb83   :  { %v1572_v55 = vadd.f32 %v1849_v52, %v1493_v51  ;;  %v1566_v56 = vpop.f32.mrb[13].mxu0 }
 0xb84   :  { %v1567_v35 = vadd.f32 %v1566_v56, %v1493_v51 }
 0xb85   :  { %v1578_v54 = vsel %vm134_vm0, %v1572_v55, 0.0 }
 0xb86   :  { %1579 = vadd.xlane.f32.xlu1 %v1578_v54  ;;  %v1575_v26 = vsel %vm134_vm0, %v1567_v35, 0.0 }
 0xb87   :  { %1576 = vadd.xlane.f32.xlu0 %v1575_v26 }
 0xc13   :  { %v1580_v53 = vpop.xlane.xlu1 %1579 }
 0xc14   :  { %v1582_v57 = vmul.f32 0.05, %v1580_v53  ;;  %v1577_v58 = vpop.xlane.xlu0 %1576 }
 0xc15   :  { %v1581_v59 = vmul.f32 0.05, %v1577_v58 }
 0xc16   :  { %v1584_v60 = vsub.f32 %v1572_v55, %v1582_v57 }
 0xc17   :  { %v1583_v61 = vsub.f32 %v1567_v35, %v1581_v59 }
 0xc18   :  { %v1586_v0 = vmul.f32 %v1584_v60, %v1584_v60 }
 0xc19   :  { %v1585_v62 = vmul.f32 %v1583_v61, %v1583_v61 }
 0xc1a   :  { %v1590_v1 = vsel %vm134_vm0, %v1586_v0, 0.0 }
 0xc1b   :  { %v1587_v63 = vsel %vm134_vm0, %v1585_v62, 0.0 }
 0xc1c   :  { %1588 = vadd.xlane.f32.xlu0 %v1587_v63 }
 0xc20   :  { %1591 = vadd.xlane.f32.xlu0 %v1590_v1 }
 0xca9   :  { %v1589_v28 = vpop.xlane.xlu0 %1588 }
 0xcaa   :  { %v1593_v2 = vmul.f32 0.05, %v1589_v28 }
 0xcac   :  { %v1595_v4 = vadd.f32 1e-05, %v1593_v2 }
 0xcad   :  { %v1592_v6 = vpop.xlane.xlu0 %1591 }
 0xcae   :  { %1984 = vrsqrt.f32 %v1595_v4  ;;  %v1594_v7 = vmul.f32 0.05, %v1592_v6 }
 0xcb0   :  { %v1596_v9 = vadd.f32 1e-05, %v1594_v7 }
 0xcb2   :  { %1986 = vrsqrt.f32 %v1596_v9 }
 0xcb8   :  { %v1985_v12 = vpop.eup %1984 }
 0xcb9   :  { %v1599_v13 = vmul.f32 %v1985_v12, %v1583_v61 }
 0xcbb   :  { %v1605_v15 = vmul.f32 %v1604_v11, %v1599_v13 }
 0xcbc   :  { %v1987_v16 = vpop.eup %1986 }
 0xcbd   :  { %v1600_v17 = vmul.f32 %v1987_v16, %v1584_v60  ;;  %v1611_v18 = vadd.f32 %v1610_v14, %v1605_v15 }
 0xcbf   :  { %v1606_v19 = vmul.f32 %v1604_v11, %v1600_v17  ;;  %vm1613_vm4 = vcmp.ge.f32.partialorder %v1611_v18, 0.0  ;;  %v1615_v20 = vmul.f32 0.01, %v1611_v18 }
 0xcc1   :  { %v1612_v21 = vadd.f32 %v1610_v14, %v1606_v19  ;;  %v1617_v22 = vsel %vm1613_vm4, %v1611_v18, %v1615_v20 }
 0xcc2   :  { %1619 = vst.msk [vmem:[#allocation14] sm:$0xff] %vm134_vm0, %v1617_v22 }
 0xcc3   :  { %vm1614_vm5 = vcmp.ge.f32.partialorder %v1612_v21, 0.0  ;;  %v1616_v27 = vmul.f32 0.01, %v1612_v21 }
 0xcc5   :  { %v1618_v23 = vsel %vm1614_vm5, %v1612_v21, %v1616_v27 }
 0xcc6   :  { %1620 = vst.msk [vmem:[#allocation14 + $0x8] sm:$0xff] %vm134_vm0, %v1618_v23 }
 0xcc7   :  { %2153 = shalt.err (!%p2150_p4)
}
 0xcc8   :  { %s2154_s9 = scalar_lea.hbm %s2530_s8, 256 }
 0xcc9   :  { %p2155_p5 = scmp.ne.s32.totalorder %s2530_s8, %s2154_s9  ;;  %p2158_p6 = scmp.lt.u32.totalorder %s2154_s9, %s2530_s8 }
 0xccb   :  { %p2160_p7 = pnand %p2158_p6, %p2155_p5 }
 0xccd   :  { %2163 = shalt.err (!%p2160_p7)
}
 0xcce   :  { %1632 = dma.vmem_to_hbm [thread:$0]  %s1627_s1, 256, %s2530_s8, [#allocation4], %s2176_s17, %s2176_s17, %s2177_s18  }
 0xccf   :  { %2172 = dma.done.wait [#allocation4], 256  }
 0xcd0   :  { %2173 = vsyncadd [#allocation4], 4294967040 }
 0xcd1   :  { %1636 = vsyncpa [#allocation3], 1 }
 0xcd2   :  { %1637 = vsyncpa [#allocation6], 1 }
 0xcd3   :  { %1638 = vsyncpa [#allocation9], 1 }
 0xcd4   :  { %1639 = vsyncpa [#allocation12], 1 }
 0xcd5   :  { %1640 = vsyncpa [#allocation4], 1 }

</bundles_post_ra>
